<compile_context>
chip_gen: v7x
topology: tpu7x:2x2x1
jax: 0.10.0
libtpu: 0.0.40
codegen_flags: <defaults>
</compile_context>

<pallas_src>
import numpy as np
import jax
import jax.numpy as jnp
from jax import lax
from jax.experimental import pallas as pl
from jax.experimental.pallas import tpu as pltpu


def _round_up(v: int, m: int) -> int:
    return ((v + m - 1) // m) * m


def _make_kernel(kernel_size, stride, padding, w, w_out_p, tr, has_mask):
    """Build the pooling kernel for a (tr, w) row tile -> (tr, w_out_p) output tile."""

    def _body(x, valid, o_ref):
        mask_f = valid.astype(jnp.float32)
        masked_x = jnp.where(valid, x, jnp.zeros_like(x))

        # Window indicator K[i, o] = 1 iff input position i lies inside output
        # window o (accounts for stride and the implicit zero padding of conv1d).
        # Generated in-kernel from iotas: zero HBM/VMEM traffic for the matrix,
        # negligible VPU cost next to the matmul.
        pos = lax.broadcasted_iota(jnp.int32, (w, w_out_p), 0)
        win = lax.broadcasted_iota(jnp.int32, (w, w_out_p), 1)
        start = win * stride - padding
        k = jnp.logical_and(pos >= start, pos < start + kernel_size).astype(jnp.float32)

        # One fused MXU matmul for both the masked sum and the valid count:
        # stack data rows and mask rows on the sublane axis so K is pushed once.
        lhs = jnp.concatenate([masked_x, mask_f], axis=0)            # (2*tr, w)
        fused = jnp.dot(lhs, k, preferred_element_type=jnp.float32)  # (2*tr, w_out_p)

        sum_pooled = fused[:tr, :]
        valid_count = jnp.maximum(fused[tr:, :], 1.0)                # clamp(min=1)
        avg = sum_pooled / valid_count
        # Faithful to the PyTorch reference: avg_pooled[avg_pooled == 0] = nan.
        o_ref[...] = jnp.where(avg == 0.0, jnp.float32(jnp.nan), avg)

    if has_mask:
        def kernel(x_ref, m_ref, o_ref):
            x = x_ref[...].astype(jnp.float32)
            valid = m_ref[...] != 0
            _body(x, valid, o_ref)
    else:
        def kernel(x_ref, o_ref):
            x = x_ref[...].astype(jnp.float32)
            valid = jnp.logical_not(jnp.isnan(x))
            _body(x, valid, o_ref)

    return kernel


def _pick_tile_rows(R, W, W_out_p, has_mask):
    """Row-tile size: multiple of 32 (int8-mask safe), capped at 512, ~8 MiB budget."""
    r8 = _round_up(R, 8)
    budget = 8 << 20
    # per-row f32 bytes: double-buffered input, concat LHS, matmul result,
    # double-buffered output.
    per_row = 4 * (2 * W + 2 * W + 2 * W_out_p + 2 * W_out_p)
    if has_mask:
        per_row += 2 * W  # int8 mask, double-buffered
    tr = max(32, min(512, ((budget // max(per_row, 1)) // 32) * 32))
    if r8 <= tr:
        # Single tile: block shape equals the (padded) full array dims, which is
        # always layout-legal regardless of divisibility by (8, 128).
        return r8, r8
    return tr, _round_up(R, tr)


def masked_avg_pool1d(x, mask=None, *, kernel_size, stride=None, padding=0):
    """JAX/Pallas equivalent of MaskedAvgPool1d.forward."""
    stride = stride or kernel_size
    ndim = x.ndim
    if ndim == 2:
        x = x[:, None, :]
        if mask is not None and mask.ndim == 2:
            mask = mask[:, None, :]
    assert x.ndim == 3, "Input tensor must have 2 or 3 dimensions (batch, channels, width)"
    if mask is not None:
        assert x.shape == mask.shape, "Input tensor and mask must have the same shape"

    B, C, W = x.shape
    W_out = (W + 2 * padding - kernel_size) // stride + 1
    assert W_out >= 1, "Pooling window does not fit into the (padded) input"
    W_out_p = _round_up(W_out, 128)  # lane-dense output stores
    R = B * C
    has_mask = mask is not None

    TR, R_pad = _pick_tile_rows(R, W, W_out_p, has_mask)

    x2 = x.reshape(R, W).astype(jnp.float32)
    if R_pad > R:
        x2 = jnp.pad(x2, ((0, R_pad - R), (0, 0)))
    inputs = [x2]
    in_specs = [pl.BlockSpec((TR, W), lambda i: (i, 0))]
    if has_mask:
        m2 = mask.reshape(R, W).astype(jnp.int8)
        if R_pad > R:
            m2 = jnp.pad(m2, ((0, R_pad - R), (0, 0)))
        inputs.append(m2)
        in_specs.append(pl.BlockSpec((TR, W), lambda i: (i, 0)))

    kernel = _make_kernel(kernel_size, stride, padding, W, W_out_p, TR, has_mask)

    # Advisory cost + explicit VMEM budget for the chosen tile.
    flops = 4 * R_pad * W * W_out_p  # fused (2*R, W) @ (W, W_out_p)
    bytes_accessed = R_pad * W * 4 + R_pad * W_out_p * 4 + (R_pad * W if has_mask else 0)
    vmem_bytes = 4 * (2 * TR * W + 2 * TR * W + 2 * TR * W_out_p + 2 * TR * W_out_p
                      + W * W_out_p)
    if has_mask:
        vmem_bytes += 2 * TR * W
    vmem_limit = int(min(max(2 * vmem_bytes, 32 << 20), 64 << 20))

    out = pl.pallas_call(
        kernel,
        out_shape=jax.ShapeDtypeStruct((R_pad, W_out_p), jnp.float32),
        grid=(R_pad // TR,),
        in_specs=in_specs,
        out_specs=pl.BlockSpec((TR, W_out_p), lambda i: (i, 0)),
        compiler_params=pltpu.CompilerParams(
            dimension_semantics=("parallel",),
            vmem_limit_bytes=vmem_limit,
        ),
        cost_estimate=pl.CostEstimate(
            flops=flops, transcendentals=0, bytes_accessed=bytes_accessed),
    )(*inputs)

    out = out[:R, :W_out].reshape(B, C, W_out)
    if ndim == 2:
        out = out[:, 0, :]
    return out


def _reference_numpy(x, mask, kernel_size, stride, padding):
    """Pure-numpy reference mirroring the PyTorch module semantics (3-D input)."""
    x = np.asarray(x, dtype=np.float32)
    B, C, W = x.shape
    if mask is None:
        mask = ~np.isnan(x)
    else:
        mask = np.asarray(mask, dtype=bool)
    masked_x = np.where(mask, x, 0.0)
    xp = np.pad(masked_x, ((0, 0), (0, 0), (padding, padding)))
    mp = np.pad(mask.astype(np.float32), ((0, 0), (0, 0), (padding, padding)))
    W_out = (W + 2 * padding - kernel_size) // stride + 1
    out = np.empty((B, C, W_out), dtype=np.float32)
    for o in range(W_out):
        s = o * stride
        win_x = xp[:, :, s:s + kernel_size].sum(-1)
        win_c = np.maximum(mp[:, :, s:s + kernel_size].sum(-1), 1.0)
        out[:, :, o] = win_x / win_c
    out[out == 0.0] = np.nan
    return out


if __name__ == "__main__":
    B, C, W = 2, 4, 16
    kernel_size, stride, padding = 4, 2, 1

    key = jax.random.PRNGKey(0)
    k1, k2, k3 = jax.random.split(key, 3)

    # Path 1: default (mask=None) — validity derived in-kernel from isnan.
    x = jax.random.normal(k1, (B, C, W), dtype=jnp.float32)
    holes = jax.random.bernoulli(k2, 0.25, (B, C, W))
    x = jnp.where(holes, jnp.float32(jnp.nan), x)
    out = jax.block_until_ready(
        masked_avg_pool1d(x, kernel_size=kernel_size, stride=stride, padding=padding))
    ref = _reference_numpy(np.asarray(x), None, kernel_size, stride, padding)
    np.testing.assert_allclose(np.asarray(out), ref, rtol=1e-5, atol=1e-5, equal_nan=True)

    # Path 2: explicit external mask (shipped as int8, cast in-kernel).
    x2 = jax.random.normal(k3, (B, C, W), dtype=jnp.float32)
    mask2 = jax.random.bernoulli(jax.random.PRNGKey(1), 0.7, (B, C, W))
    out2 = jax.block_until_ready(
        masked_avg_pool1d(x2, mask2, kernel_size=kernel_size, stride=stride,
                          padding=padding))
    ref2 = _reference_numpy(np.asarray(x2), np.asarray(mask2), kernel_size, stride, padding)
    np.testing.assert_allclose(np.asarray(out2), ref2, rtol=1e-5, atol=1e-5, equal_nan=True)

    print("KERNEL_OK")
</pallas_src>

<mosaic_0001>
module attributes {stable_mosaic.version = 11 : i64} {
  func.func @kernel(%arg0: i32, %arg1: memref<8x16xf32, #tpu.memory_space<vmem>>, %arg2: memref<8x128xf32, #tpu.memory_space<vmem>>) attributes {dimension_semantics = [#tpu.dimension_semantics<parallel>], iteration_bounds = array<i64: 1>, scalar_prefetch = 0 : i64, scratch_operands = 0 : i64, tpu.core_type = #tpu.core_type<tc>, window_params = [{transform_indices = @transform_0, window_bounds = array<i64: 8, 16>}, {transform_indices = @transform_1, window_bounds = array<i64: 8, 128>}]} {
    %c0 = arith.constant 0 : index
    %c0_0 = arith.constant 0 : index
    %0 = vector.load %arg1[%c0, %c0_0] : memref<8x16xf32, #tpu.memory_space<vmem>>, vector<8x16xf32>
    %1 = arith.cmpf one, %0, %0 : vector<8x16xf32>
    %cst = arith.constant dense<true> : vector<8x16xi1>
    %2 = arith.xori %1, %cst : vector<8x16xi1>
    %3 = arith.extui %2 : vector<8x16xi1> to vector<8x16xi32>
    %4 = arith.sitofp %3 : vector<8x16xi32> to vector<8x16xf32>
    %cst_1 = arith.constant 0.000000e+00 : f32
    %5 = vector.broadcast %cst_1 : f32 to vector<8x16xf32>
    %6 = arith.select %2, %0, %5 : vector<8x16xi1>, vector<8x16xf32>
    %7 = tpu.iota {dimensions = array<i32: 0>} : vector<16x128xi32>
    %8 = tpu.iota {dimensions = array<i32: 1>} : vector<16x128xi32>
    %c2_i32 = arith.constant 2 : i32
    %9 = vector.broadcast %c2_i32 : i32 to vector<16x128xi32>
    %10 = arith.muli %8, %9 : vector<16x128xi32>
    %c1_i32 = arith.constant 1 : i32
    %11 = vector.broadcast %c1_i32 : i32 to vector<16x128xi32>
    %12 = arith.subi %10, %11 : vector<16x128xi32>
    %13 = arith.cmpi sge, %7, %12 : vector<16x128xi32>
    %c4_i32 = arith.constant 4 : i32
    %14 = vector.broadcast %c4_i32 : i32 to vector<16x128xi32>
    %15 = arith.addi %12, %14 : vector<16x128xi32>
    %16 = arith.cmpi slt, %7, %15 : vector<16x128xi32>
    %17 = arith.andi %13, %16 : vector<16x128xi1>
    %18 = arith.extui %17 : vector<16x128xi1> to vector<16x128xi32>
    %19 = arith.sitofp %18 : vector<16x128xi32> to vector<16x128xf32>
    %20 = tpu.concatenate %6, %4 in 0 : vector<8x16xf32>, vector<8x16xf32> -> vector<16x16xf32>
    %cst_2 = arith.constant dense<0.000000e+00> : vector<16x128xf32>
    %21 = tpu.matmul %20, %19, %cst_2 {dimension_numbers = #tpu.dot_dimension_numbers<[1], [0], [0], [1], [0, 0, 1, 1], [], []>} : vector<16x16xf32>, vector<16x128xf32>, vector<16x128xf32> -> vector<16x128xf32>
    %22 = vector.extract_strided_slice %21 {offsets = [0, 0], sizes = [8, 128], strides = [1, 1]} : vector<16x128xf32> to vector<8x128xf32>
    %23 = vector.extract_strided_slice %21 {offsets = [8, 0], sizes = [8, 128], strides = [1, 1]} : vector<16x128xf32> to vector<8x128xf32>
    %cst_3 = arith.constant 1.000000e+00 : f32
    %24 = vector.broadcast %cst_3 : f32 to vector<8x128xf32>
    %25 = arith.maximumf %23, %24 : vector<8x128xf32>
    %26 = arith.divf %22, %25 : vector<8x128xf32>
    %cst_4 = arith.constant 0.000000e+00 : f32
    %27 = vector.broadcast %cst_4 : f32 to vector<8x128xf32>
    %28 = arith.cmpf oeq, %26, %27 : vector<8x128xf32>
    %cst_5 = arith.constant 0x7FC00000 : f32
    %29 = vector.broadcast %cst_5 : f32 to vector<8x128xf32>
    %30 = arith.select %28, %29, %26 : vector<8x128xi1>, vector<8x128xf32>
    %c0_6 = arith.constant 0 : index
    %c0_7 = arith.constant 0 : index
    %31 = vector.load %arg2[%c0_6, %c0_7] : memref<8x128xf32, #tpu.memory_space<vmem>>, vector<8x128xf32>
    tpu.vector_store %arg2[%c0_6, %c0_7], %30 {strides = array<i32>} : memref<8x128xf32, #tpu.memory_space<vmem>>, vector<8x128xf32>,
    return
  }
  func.func @transform_0(%arg0: i32) -> (i32, i32) {
    %c0_i32 = arith.constant 0 : i32
    %c0_i32_0 = arith.constant 0 : i32
    return %arg0, %c0_i32 : i32, i32
  }
  func.func @transform_1(%arg0: i32) -> (i32, i32) {
    %c0_i32 = arith.constant 0 : i32
    %c0_i32_0 = arith.constant 0 : i32
    return %arg0, %c0_i32 : i32, i32
  }
}

</mosaic_0001>

<bundles_post_ra>
// kernel: tpu_custom_call.1
= control target key start
LH: loop header
LB: loop body
LE: loop exit
PB: predicated region body
PF: predicated region fallthrough
CT: control target
= control target key end

     0   :  { %6 = vsyncpa [#allocation3], 0  ;;  %s267_s0 = inlined_call_operand.hbm [shape: f32[8,16], index: 0, kind: input, shape index: {}]   ;;  %s268_s1 = inlined_call_operand.hbm [shape: f32[8,128], index: 1, kind: output, shape index: {}]  }
   0x1   :  { %7 = vsyncpa [#allocation4], 0  ;;  %s226_s6 = smov [#allocation2]   ;;  %s178_s10 = scalar_lea.hbm %s267_s0, 128 }
   0x2   :  { %s14_s7 = sshll.u32 %s226_s6, 4  ;;  %p179_p0 = scmp.ne.s32.totalorder %s267_s0, %s178_s10  ;;  %s15_s7 = int_to_ptr.vmem [resolvable:$true] %s14_s7 }
   0x3   :  { %p182_p1 = scmp.lt.u32.totalorder %s178_s10, %s267_s0 }
   0x5   :  { %p184_p2 = pnand %p182_p1, %p179_p0 }
   0x7   :  { %187 = shalt.err (!%p184_p2)
}
   0x8   :  { %s188_s15 = scalar_lea.vmem %s15_s7, 128  ;;  %p193_p4 = scmp.lt.s32.totalorder %s15_s7, %s15_s7 }
   0x9   :  { %p189_p3 = scmp.ne.s32.totalorder %s15_s7, %s188_s15  ;;  %p194_p5 = scmp.lt.s32.totalorder %s188_s15, %s188_s15 }
   0xb   :  { %p195_p6 = por %p194_p5, %p193_p4 }
   0xd   :  { %p196_p7 = pnand %p195_p6, %p189_p3 }
   0xf   :  { %199 = shalt.err (!%p196_p7)
}
  0x10   :  { %17 = dma.hbm_to_vmem [thread:$0]  %s267_s0, 128, %s15_s7, [#allocation3]  }
  0x11   :  { %222 = dma.done.wait [#allocation3], 128  }
  0x12   :  { %223 = vsyncadd [#allocation3], 4294967168  ;;  %v27_v0 = vlaneseq  ;;  %v21_v6 = vld [vmem:[#allocation2] sm:$0xff]  ;;  %vm45_vm2 = vcmask 130048   ;;  %vm227_vm4 = vmmov 1   ;;  %v229_v10 = vmov 0.0  }
  0x13   :  { %vm22_vm1 = vcmp.ne.f32.partialorder %v21_v6, %v21_v6  ;;  %v228_v9 = vmov 1.0|1.0   ;;  %s230_s0 = smov [#allocation5]  }
  0x14   :  { %v28_v1 = vshrl.u32 %v27_v0, 7  ;;  %v31_v2 = vand.u32 127, %v27_v0  ;;  %vm23_vm5 = vmxor %vm22_vm1, %vm227_vm4  ;;  %s139_s18 = sshll.u32 %s230_s0, 4  ;;  %s140_s18 = int_to_ptr.vmem [resolvable:$true] %s139_s18 }
  0x15   :  { %v26_v8 = vsel %vm23_vm5, %v21_v6, 0.0  ;;  %v148_v11 = vsel %vm23_vm5, 1.0, %v229_v10  ;;  %s200_s19 = scalar_lea.vmem %s140_s18, 128  ;;  %p205_p9 = scmp.lt.s32.totalorder %s140_s18, %s140_s18 }
  0x16   :  { %v32_v3 = vmul.u32 2, %v31_v2  ;;  %v29_v4 = vadd.s32 8, %v28_v1  ;;  %164 = vmatprep.mubr.msk.f32.mxu0 %vm45_vm2, %v26_v8  ;;  %p201_p8 = scmp.ne.s32.totalorder %s140_s18, %s200_s19  ;;  %p206_p10 = scmp.lt.s32.totalorder %s200_s19, %s200_s19 }
  0x18   :  { %v149_v5 = vadd.s32 4294967295, %v32_v3  ;;  %p207_p11 = por %p206_p10, %p205_p9 }
  0x1a   :  { %vm34_vm0 = vcmp.ge.s32.totalorder %v28_v1, %v149_v5  ;;  %v36_v7 = vadd.s32 4, %v149_v5  ;;  %vm35_vm3 = vcmp.ge.s32.totalorder %v29_v4, %v149_v5  ;;  %p208_p12 = pnand %p207_p11, %p201_p8 }
  0x1c   :  { %vm37_vm6 = vcmp.lt.s32.totalorder %v28_v1, %v36_v7  ;;  %vm38_vm7 = vcmp.lt.s32.totalorder %v29_v4, %v36_v7 }
  0x1d   :  { %vm39_vm8 = vmand %vm34_vm0, %vm37_vm6 }
  0x1e   :  { %vm40_vm9 = vmand %vm35_vm3, %vm38_vm7 }
  0x1f   :  { %vm167_vm10 = vmpackc.low %vm40_vm9, %vm39_vm8 }
  0x20   :  { %168 = vmatprep.subr.msk.bf16.mxu0 %vm167_vm10, %v228_v9 }
  0x21   :  { %170 = vmatpush3.bf16.msk.msra.mxu0 %vm167_vm10, %v228_v9 }
  0x24   :  { %165 = vmatmul.mubr.msk.f32.vlgmr.msra.gmra.mrb[0].mxu0 %vm45_vm2, %v148_v11 }
  0xf7   :  { %v166_v12 = vpop.f32.mrb[0].mxu0 }
  0xf8   :  { %v127_v13 = vmax.f32 %v166_v12, 1.0  ;;  %v118_v14 = vpop.f32.mrb[1].mxu0 }
  0xfa   :  { %176 = vrcp.f32 %v127_v13 }
 0x104   :  { %v177_v15 = vpop.eup %176 }
 0x105   :  { %v129_v16 = vmul.f32 %v177_v15, %v118_v14 }
 0x107   :  { %vm130_vm11 = vcmp.eq.f32.partialorder %v129_v16, 0.0 }
 0x108   :  { %v131_v17 = vsel %vm130_vm11, nan, %v129_v16 }
 0x109   :  { %132 = vst [vmem:[#allocation5] sm:$0xff] %v131_v17 }
 0x10a   :  { %211 = shalt.err (!%p208_p12)
}
 0x10b   :  { %s212_s22 = scalar_lea.hbm %s268_s1, 128 }
 0x10c   :  { %p213_p13 = scmp.ne.s32.totalorder %s268_s1, %s212_s22  ;;  %p216_p0 = scmp.lt.u32.totalorder %s212_s22, %s268_s1 }
 0x10e   :  { %p218_p1 = pnand %p216_p0, %p213_p13 }
 0x110   :  { %221 = shalt.err (!%p218_p1)
}
 0x111   :  { %142 = dma.vmem_to_hbm [thread:$0]  %s140_s18, 128, %s268_s1, [#allocation4]  }
 0x112   :  { %224 = dma.done.wait [#allocation4], 128  }
 0x113   :  { %225 = vsyncadd [#allocation4], 4294967168 }
 0x114   :  { %146 = vsyncpa [#allocation3], 1 }
 0x115   :  { %147 = vsyncpa [#allocation4], 1 }

</bundles_post_ra>
